<compile_context>
chip_gen: v7x
topology: tpu7x:2x2x1
jax: 0.10.0
libtpu: 0.0.40
codegen_flags: <defaults>
</compile_context>

<pallas_src>
import functools
import math

import jax
import jax.numpy as jnp
from jax import lax
from jax.experimental import pallas as pl
from jax.experimental.pallas import tpu as pltpu

LN_EPS = 1e-12  # BERT default layer_norm_eps


# ------------------------------ config helpers -------------------------------

def _default_vmem_limit():
    """Explicit scoped-VMEM limit: 96 MiB cap, 75% of physical (v7x = 48 MiB)."""
    try:
        cap = pltpu.get_tpu_info().vmem_capacity_bytes
    except Exception:
        cap = 64 * 1024 * 1024  # conservative (v7x-sized) fallback
    return int(min(96 * 1024 * 1024, 0.75 * cap))


_VMEM_LIMIT = _default_vmem_limit()


def _pick_tile(dim, target, align):
    """Largest multiple of `align` <= target that divides dim, else full dim."""
    t = min(target, dim)
    if t % align == 0 and dim % t == 0:
        return t
    t = (t // align) * align
    while t >= align:
        if dim % t == 0:
            return t
        t -= align
    return dim  # full dimension (always a legal block size)


def _head_group(nH, dh, S):
    """Heads per attention grid step: capped by S (v7x VMEM), lane-aligned output."""
    cap = 8
    if S >= 1024:
        cap = 2
    elif S >= 512:
        cap = 4
    for g in range(min(nH, cap), 0, -1):
        if nH % g == 0 and (g * dh) % 128 == 0:
            return g
    return nH  # fall back: G*dh == H == full last dim (always legal)


# ----------------------------- Pallas kernels --------------------------------

def _ln(y, g, b):
    mean = jnp.mean(y, axis=-1, keepdims=True)
    var = jnp.mean(jnp.square(y - mean), axis=-1, keepdims=True)
    inv = lax.rsqrt(var + LN_EPS)
    return (y - mean) * inv * g + b


def _gelu(y):
    # exact (erf-based) GELU as in BERT; epilogue math stays f32
    return 0.5 * y * (1.0 + lax.erf(y * (1.0 / math.sqrt(2.0))))


def _linear_kernel_fullk(x_ref, w_ref, b_ref, o_ref, *, activation):
    """Single-shot matmul (full K in one block): grid=(N/tn, T/tm)."""
    y = jnp.dot(x_ref[...], w_ref[...], preferred_element_type=jnp.float32)
    y = y + b_ref[...]
    if activation == "gelu":
        y = _gelu(y)
    o_ref[...] = y.astype(o_ref.dtype)


def _linear_kernel_ktiled(x_ref, w_ref, b_ref, o_ref, acc_ref, *, activation):
    """K-tiled matmul: grid=(T/tm, N/tn, K/tk), f32 VMEM accumulator."""
    k = pl.program_id(2)

    @pl.when(k == 0)
    def _():
        acc_ref[...] = jnp.zeros_like(acc_ref)

    acc_ref[...] += jnp.dot(x_ref[...], w_ref[...],
                            preferred_element_type=jnp.float32)

    @pl.when(k == pl.num_programs(2) - 1)
    def _():
        y = acc_ref[...] + b_ref[...]
        if activation == "gelu":
            y = _gelu(y)
        o_ref[...] = y.astype(o_ref.dtype)


def _linear_add_ln_kernel_fullk(x_ref, w_ref, b_ref, res_ref, g_ref, beta_ref,
                                o_ref):
    """Matmul fused with residual-add + LayerNorm epilogue (full K)."""
    y = jnp.dot(x_ref[...], w_ref[...], preferred_element_type=jnp.float32)
    y = y + b_ref[...] + res_ref[...].astype(jnp.float32)
    o_ref[...] = _ln(y, g_ref[...], beta_ref[...]).astype(o_ref.dtype)


def _linear_add_ln_kernel_ktiled(x_ref, w_ref, b_ref, res_ref, g_ref, beta_ref,
                                 o_ref, acc_ref):
    """K-tiled matmul fused with residual-add + LayerNorm epilogue."""
    k = pl.program_id(1)

    @pl.when(k == 0)
    def _():
        acc_ref[...] = jnp.zeros_like(acc_ref)

    acc_ref[...] += jnp.dot(x_ref[...], w_ref[...],
                            preferred_element_type=jnp.float32)

    @pl.when(k == pl.num_programs(1) - 1)
    def _():
        y = acc_ref[...] + b_ref[...] + res_ref[...].astype(jnp.float32)
        o_ref[...] = _ln(y, g_ref[...], beta_ref[...]).astype(o_ref.dtype)


def _layernorm_kernel(x_ref, g_ref, b_ref, o_ref):
    o_ref[...] = _ln(x_ref[...], g_ref[...], b_ref[...]).astype(o_ref.dtype)


def _attention_kernel(q_ref, k_ref, v_ref, m_ref, o_ref, *, scale, G, dh):
    """Exact softmax attention for a group of G heads, one q-block of one batch.

    Inputs:  q (1,G,tq,dh), k/v (1,G,S,dh) bf16, mask (1,1,S) f32.
    Output:  (1, tq, G*dh) bf16 -- heads concatenated on lanes (lane-dense store).
    """
    qa = q_ref[0]            # (G, tq, dh)
    ka = k_ref[0]            # (G, S, dh)
    va = v_ref[0]            # (G, S, dh)
    m = m_ref[0]             # (1, S) additive mask over key axis
    ctxs = []
    for g in range(G):       # static unroll over the head group
        s = lax.dot_general(qa[g], ka[g], (((1,), (1,)), ((), ())),
                            preferred_element_type=jnp.float32)   # (tq, S)
        s = s * scale + m
        s = s - jnp.max(s, axis=-1, keepdims=True)
        p = jnp.exp(s)
        # approx reciprocal on the EUP: ~1e-3 rel. error in the normalization
        p = p * pl.reciprocal(jnp.sum(p, axis=-1, keepdims=True), approx=True)
        ctxs.append(jnp.dot(p.astype(va.dtype), va[g],
                            preferred_element_type=jnp.float32))  # (tq, dh)
    o_ref[0] = jnp.concatenate(ctxs, axis=-1).astype(o_ref.dtype)
    # TODO(synk): for S >~ 2K switch to a KV-tiled flash-style online softmax
    # (keep the additive mask applied before the running max).


# ------------------------------- wrappers -------------------------------------

def linear(x, w, b, activation=None, out_dtype=jnp.bfloat16):
    T, K = x.shape
    N = w.shape[1]
    tm = _pick_tile(T, 512, 16)                       # 16-aligned for bf16 packing
    tn = N if N <= 1024 else _pick_tile(N, 512, 128)
    tk = K if K <= 1536 else _pick_tile(K, 512, 128)
    x = x.astype(jnp.bfloat16)
    b2 = b.reshape(1, N).astype(jnp.float32)

    if tk == K:
        # No K axis; weight block indexed only by j -> resident across token steps.
        kern = functools.partial(_linear_kernel_fullk, activation=activation)
        return pl.pallas_call(
            kern,
            out_shape=jax.ShapeDtypeStruct((T, N), out_dtype),
            grid=(N // tn, T // tm),
            in_specs=[pl.BlockSpec((tm, K), lambda j, i: (i, 0)),
                      pl.BlockSpec((K, tn), lambda j, i: (0, j)),
                      pl.BlockSpec((1, tn), lambda j, i: (0, j))],
            out_specs=pl.BlockSpec((tm, tn), lambda j, i: (i, j)),
            compiler_params=pltpu.CompilerParams(
                dimension_semantics=("parallel", "parallel"),
                vmem_limit_bytes=_VMEM_LIMIT),
        )(x, w, b2)

    kern = functools.partial(_linear_kernel_ktiled, activation=activation)
    return pl.pallas_call(
        kern,
        out_shape=jax.ShapeDtypeStruct((T, N), out_dtype),
        grid=(T // tm, N // tn, K // tk),
        in_specs=[pl.BlockSpec((tm, tk), lambda i, j, k: (i, k)),
                  pl.BlockSpec((tk, tn), lambda i, j, k: (k, j)),
                  pl.BlockSpec((1, tn), lambda i, j, k: (0, j))],
        out_specs=pl.BlockSpec((tm, tn), lambda i, j, k: (i, j)),
        scratch_shapes=[pltpu.VMEM((tm, tn), jnp.float32)],
        compiler_params=pltpu.CompilerParams(
            dimension_semantics=("parallel", "parallel", "arbitrary"),
            vmem_limit_bytes=_VMEM_LIMIT),
    )(x, w, b2)


def linear_add_ln(x, w, b, res, g, beta, out_dtype=jnp.bfloat16):
    """y = LayerNorm(x @ w + b + res); full hidden dim kept in one block."""
    T, K = x.shape
    N = w.shape[1]
    tm = _pick_tile(T, 512, 16)
    tk = K if K <= 1536 else _pick_tile(K, 512, 128)
    x = x.astype(jnp.bfloat16)
    b2 = b.reshape(1, N).astype(jnp.float32)
    g2 = g.reshape(1, N).astype(jnp.float32)
    beta2 = beta.reshape(1, N).astype(jnp.float32)

    if tk == K:
        return pl.pallas_call(
            _linear_add_ln_kernel_fullk,
            out_shape=jax.ShapeDtypeStruct((T, N), out_dtype),
            grid=(T // tm,),
            in_specs=[pl.BlockSpec((tm, K), lambda i: (i, 0)),
                      pl.BlockSpec((K, N), lambda i: (0, 0)),
                      pl.BlockSpec((1, N), lambda i: (0, 0)),
                      pl.BlockSpec((tm, N), lambda i: (i, 0)),
                      pl.BlockSpec((1, N), lambda i: (0, 0)),
                      pl.BlockSpec((1, N), lambda i: (0, 0))],
            out_specs=pl.BlockSpec((tm, N), lambda i: (i, 0)),
            compiler_params=pltpu.CompilerParams(
                dimension_semantics=("parallel",),
                vmem_limit_bytes=_VMEM_LIMIT),
        )(x, w, b2, res, g2, beta2)

    return pl.pallas_call(
        _linear_add_ln_kernel_ktiled,
        out_shape=jax.ShapeDtypeStruct((T, N), out_dtype),
        grid=(T // tm, K // tk),
        in_specs=[pl.BlockSpec((tm, tk), lambda i, k: (i, k)),
                  pl.BlockSpec((tk, N), lambda i, k: (k, 0)),
                  pl.BlockSpec((1, N), lambda i, k: (0, 0)),
                  pl.BlockSpec((tm, N), lambda i, k: (i, 0)),
                  pl.BlockSpec((1, N), lambda i, k: (0, 0)),
                  pl.BlockSpec((1, N), lambda i, k: (0, 0))],
        out_specs=pl.BlockSpec((tm, N), lambda i, k: (i, 0)),
        scratch_shapes=[pltpu.VMEM((tm, N), jnp.float32)],
        compiler_params=pltpu.CompilerParams(
            dimension_semantics=("parallel", "arbitrary"),
            vmem_limit_bytes=_VMEM_LIMIT),
    )(x, w, b2, res, g2, beta2)


def layernorm(x, g, b, out_dtype=jnp.bfloat16):
    T, H = x.shape
    tm = _pick_tile(T, 512, 8)
    return pl.pallas_call(
        _layernorm_kernel,
        out_shape=jax.ShapeDtypeStruct((T, H), out_dtype),
        grid=(T // tm,),
        in_specs=[pl.BlockSpec((tm, H), lambda i: (i, 0)),
                  pl.BlockSpec((1, H), lambda i: (0, 0)),
                  pl.BlockSpec((1, H), lambda i: (0, 0))],
        out_specs=pl.BlockSpec((tm, H), lambda i: (i, 0)),
        compiler_params=pltpu.CompilerParams(
            dimension_semantics=("parallel",),
            vmem_limit_bytes=_VMEM_LIMIT),
    )(x.astype(jnp.float32), g.reshape(1, H).astype(jnp.float32),
      b.reshape(1, H).astype(jnp.float32))


def attention_core(q, k, v, mask_add, scale):
    # q, k, v: (B, nH, S, dh) bf16; mask_add: (B, 1, S) f32
    # returns: (B, S, H) bf16 with head h occupying columns [h*dh, (h+1)*dh)
    B, nH, S, dh = q.shape
    H = nH * dh
    G = _head_group(nH, dh, S)        # heads per grid step (v7x-safe, lane-aligned)
    tq = _pick_tile(S, 256, 8)        # query-block tiling; exact softmax per block
    kern = functools.partial(_attention_kernel, scale=scale, G=G, dh=dh)
    return pl.pallas_call(
        kern,
        out_shape=jax.ShapeDtypeStruct((B, S, H), jnp.bfloat16),
        grid=(B, nH // G, S // tq),
        in_specs=[pl.BlockSpec((1, G, tq, dh), lambda b, g, qi: (b, g, qi, 0)),
                  pl.BlockSpec((1, G, S, dh), lambda b, g, qi: (b, g, 0, 0)),
                  pl.BlockSpec((1, G, S, dh), lambda b, g, qi: (b, g, 0, 0)),
                  pl.BlockSpec((1, 1, S), lambda b, g, qi: (b, 0, 0))],
        out_specs=pl.BlockSpec((1, tq, G * dh), lambda b, g, qi: (b, qi, g)),
        compiler_params=pltpu.CompilerParams(
            dimension_semantics=("parallel", "parallel", "parallel"),
            vmem_limit_bytes=_VMEM_LIMIT),
    )(q, k, v, mask_add)


# --------------------------- parameter init -----------------------------------

def init_params(key, cfg):
    H = cfg["hidden_size"]
    I = cfg["intermediate_size"]
    std = 0.02

    def nrm(k, shape, dtype=jnp.bfloat16):
        return (std * jax.random.normal(k, shape, jnp.float32)).astype(dtype)

    keys = iter(jax.random.split(key, 8 + 8 * cfg["num_hidden_layers"]))
    params = {
        "word_emb": nrm(next(keys), (cfg["vocab_size"], H), jnp.float32),
        "pos_emb":  nrm(next(keys), (cfg["max_position_embeddings"], H), jnp.float32),
        "type_emb": nrm(next(keys), (cfg["type_vocab_size"], H), jnp.float32),
        "emb_ln_g": jnp.ones((H,), jnp.float32),
        "emb_ln_b": jnp.zeros((H,), jnp.float32),
        "layers": [],
    }
    for _ in range(cfg["num_hidden_layers"]):
        # Q/K/V fused into one (H, 3H) weight; dense weights stored bf16.
        wq = nrm(next(keys), (H, H))
        wk = nrm(next(keys), (H, H))
        wv = nrm(next(keys), (H, H))
        lp = {
            "Wqkv": jnp.concatenate([wq, wk, wv], axis=1),            # (H, 3H) bf16
            "bqkv": jnp.zeros((3 * H,), jnp.float32),
            "Wo": nrm(next(keys), (H, H)), "bo": jnp.zeros((H,), jnp.float32),
            "ln1_g": jnp.ones((H,), jnp.float32), "ln1_b": jnp.zeros((H,), jnp.float32),
            "Wi": nrm(next(keys), (H, I)), "bi": jnp.zeros((I,), jnp.float32),
            "Wo2": nrm(next(keys), (I, H)), "bo2": jnp.zeros((H,), jnp.float32),
            "ln2_g": jnp.ones((H,), jnp.float32), "ln2_b": jnp.zeros((H,), jnp.float32),
        }
        params["layers"].append(lp)
    return params


# ------------------------------ forward pass -----------------------------------

def encoder_forward(params, cfg, input_ids, attention_mask=None,
                    token_type_ids=None):
    B, S = input_ids.shape
    H = cfg["hidden_size"]
    nH = cfg["num_attention_heads"]
    dh = H // nH
    T = B * S

    # ---- Embeddings (gathers are glue; LayerNorm in Pallas, bf16 output) ----
    we = jnp.take(params["word_emb"], input_ids, axis=0)                  # (B,S,H)
    pe = jnp.take(params["pos_emb"], jnp.arange(S), axis=0)[None, :, :]   # (1,S,H)
    if token_type_ids is None:
        token_type_ids = jnp.zeros((B, S), jnp.int32)
    te = jnp.take(params["type_emb"], token_type_ids, axis=0)             # (B,S,H)
    emb_sum = (we + pe + te).reshape(T, H).astype(jnp.float32)
    x = layernorm(emb_sum, params["emb_ln_g"], params["emb_ln_b"])        # (T,H) bf16
    # dropout: identity in eval mode

    # ---- additive attention mask, (B, 1, S) — no per-head repeat ----
    if attention_mask is None:
        mask_b = jnp.zeros((B, 1, S), jnp.float32)
    else:
        mask_b = ((1.0 - attention_mask.astype(jnp.float32)) * -10000.0
                  ).reshape(B, 1, S)

    scale = 1.0 / math.sqrt(dh)

    # ---- encoder layers ----
    for lp in params["layers"]:
        qkv = linear(x, lp["Wqkv"], lp["bqkv"], out_dtype=jnp.bfloat16)   # (T, 3H)
        # single relayout pass: (T,3H) -> (3, B, nH, S, dh)
        qkv = qkv.reshape(B, S, 3, nH, dh).transpose(2, 0, 3, 1, 4)
        ctx = attention_core(qkv[0], qkv[1], qkv[2], mask_b, scale)       # (B,S,H) bf16
        # out-projection fused with residual-add + LayerNorm 1 (bf16 out)
        x = linear_add_ln(ctx.reshape(T, H), lp["Wo"], lp["bo"], x,
                          lp["ln1_g"], lp["ln1_b"])
        # FFN up + GELU (bf16), then down-proj fused with Add&Norm 2
        inter = linear(x, lp["Wi"], lp["bi"], activation="gelu",
                       out_dtype=jnp.bfloat16)
        x = linear_add_ln(inter, lp["Wo2"], lp["bo2"], x,
                          lp["ln2_g"], lp["ln2_b"])

    return x.reshape(B, S, H).astype(jnp.float32)


# ---------------------------------- main ---------------------------------------

if __name__ == "__main__":
    cfg = dict(
        vocab_size=100,
        hidden_size=32,
        num_hidden_layers=2,
        num_attention_heads=2,
        intermediate_size=64,
        max_position_embeddings=16,
        type_vocab_size=2,
    )

    key = jax.random.PRNGKey(0)
    k_param, k_ids = jax.random.split(key)
    params = init_params(k_param, cfg)

    B, S = 2, 8
    input_ids = jax.random.randint(k_ids, (B, S), 0, cfg["vocab_size"], jnp.int32)
    attention_mask = jnp.ones((B, S), jnp.int32).at[1, 6:].set(0)  # mask tail of ex. 1

    out = encoder_forward(params, cfg, input_ids, attention_mask=attention_mask)
    out = jax.block_until_ready(out)
    assert out.shape == (B, S, cfg["hidden_size"])
    assert jnp.all(jnp.isfinite(out))
    print("KERNEL_OK")
</pallas_src>

<mosaic_0001>
module attributes {stable_mosaic.version = 11 : i64} {
  func.func @_layernorm_kernel(%arg0: i32, %arg1: memref<16x32xf32, #tpu.memory_space<vmem>>, %arg2: memref<1x32xf32, #tpu.memory_space<vmem>>, %arg3: memref<1x32xf32, #tpu.memory_space<vmem>>, %arg4: memref<16x32xbf16, #tpu.memory_space<vmem>>) attributes {dimension_semantics = [#tpu.dimension_semantics<parallel>], iteration_bounds = array<i64: 1>, scalar_prefetch = 0 : i64, scratch_operands = 0 : i64, tpu.core_type = #tpu.core_type<tc>, window_params = [{transform_indices = @transform_0, window_bounds = array<i64: 16, 32>}, {pipeline_mode = #tpu.pipeline_mode<synchronous>, transform_indices = @transform_1, window_bounds = array<i64: 1, 32>}, {pipeline_mode = #tpu.pipeline_mode<synchronous>, transform_indices = @transform_2, window_bounds = array<i64: 1, 32>}, {transform_indices = @transform_3, window_bounds = array<i64: 16, 32>}]} {
    %c0 = arith.constant 0 : index
    %c0_0 = arith.constant 0 : index
    %0 = vector.load %arg1[%c0, %c0_0] : memref<16x32xf32, #tpu.memory_space<vmem>>, vector<16x32xf32>
    %c0_1 = arith.constant 0 : index
    %c0_2 = arith.constant 0 : index
    %1 = vector.load %arg2[%c0_1, %c0_2] : memref<1x32xf32, #tpu.memory_space<vmem>>, vector<1x32xf32>
    %c0_3 = arith.constant 0 : index
    %c0_4 = arith.constant 0 : index
    %2 = vector.load %arg3[%c0_3, %c0_4] : memref<1x32xf32, #tpu.memory_space<vmem>>, vector<1x32xf32>
    %cst = arith.constant dense<0.000000e+00> : vector<16xf32>
    %3 = vector.multi_reduction <add>, %0, %cst [1] : vector<16x32xf32> to vector<16xf32>
    %4 = vector.shape_cast %3 : vector<16xf32> to vector<16x1xf32>
    %cst_5 = arith.constant 3.200000e+01 : f32
    %5 = vector.broadcast %cst_5 : f32 to vector<16x1xf32>
    %6 = arith.divf %4, %5 : vector<16x1xf32>
    %7 = vector.broadcast %6 : vector<16x1xf32> to vector<16x32xf32>
    %8 = arith.subf %0, %7 : vector<16x32xf32>
    %9 = arith.mulf %8, %8 : vector<16x32xf32>
    %cst_6 = arith.constant dense<0.000000e+00> : vector<16xf32>
    %10 = vector.multi_reduction <add>, %9, %cst_6 [1] : vector<16x32xf32> to vector<16xf32>
    %11 = vector.shape_cast %10 : vector<16xf32> to vector<16x1xf32>
    %cst_7 = arith.constant 3.200000e+01 : f32
    %12 = vector.broadcast %cst_7 : f32 to vector<16x1xf32>
    %13 = arith.divf %11, %12 : vector<16x1xf32>
    %cst_8 = arith.constant 9.99999996E-13 : f32
    %14 = vector.broadcast %cst_8 : f32 to vector<16x1xf32>
    %15 = arith.addf %13, %14 : vector<16x1xf32>
    %16 = math.rsqrt %15 : vector<16x1xf32>
    %17 = vector.broadcast %6 : vector<16x1xf32> to vector<16x32xf32>
    %18 = arith.subf %0, %17 : vector<16x32xf32>
    %19 = vector.broadcast %16 : vector<16x1xf32> to vector<16x32xf32>
    %20 = arith.mulf %18, %19 : vector<16x32xf32>
    %21 = vector.broadcast %1 : vector<1x32xf32> to vector<16x32xf32>
    %22 = arith.mulf %20, %21 : vector<16x32xf32>
    %23 = vector.broadcast %2 : vector<1x32xf32> to vector<16x32xf32>
    %24 = arith.addf %22, %23 : vector<16x32xf32>
    %25 = arith.truncf %24 : vector<16x32xf32> to vector<16x32xbf16>
    %c0_9 = arith.constant 0 : index
    %c0_10 = arith.constant 0 : index
    %26 = vector.load %arg4[%c0_9, %c0_10] : memref<16x32xbf16, #tpu.memory_space<vmem>>, vector<16x32xbf16>
    tpu.vector_store %arg4[%c0_9, %c0_10], %25 {strides = array<i32>} : memref<16x32xbf16, #tpu.memory_space<vmem>>, vector<16x32xbf16>,
    return
  }
  func.func @transform_0(%arg0: i32) -> (i32, i32) {
    %c0_i32 = arith.constant 0 : i32
    %c0_i32_0 = arith.constant 0 : i32
    return %arg0, %c0_i32 : i32, i32
  }
  func.func @transform_1(%arg0: i32) -> (i32, i32) {
    %c0_i32 = arith.constant 0 : i32
    %c0_i32_0 = arith.constant 0 : i32
    %c0_i32_1 = arith.constant 0 : i32
    return %c0_i32, %c0_i32_0 : i32, i32
  }
  func.func @transform_2(%arg0: i32) -> (i32, i32) {
    %c0_i32 = arith.constant 0 : i32
    %c0_i32_0 = arith.constant 0 : i32
    %c0_i32_1 = arith.constant 0 : i32
    return %c0_i32, %c0_i32_0 : i32, i32
  }
  func.func @transform_3(%arg0: i32) -> (i32, i32) {
    %c0_i32 = arith.constant 0 : i32
    %c0_i32_0 = arith.constant 0 : i32
    return %arg0, %c0_i32 : i32, i32
  }
}

</mosaic_0001>

<bundles_post_ra>
// kernel: tpu_custom_call.1
= control target key start
LH: loop header
LB: loop body
LE: loop exit
PB: predicated region body
PF: predicated region fallthrough
CT: control target
= control target key end

     0   :  { %8 = vsyncpa [#allocation3], 0  ;;  %s229_s0 = inlined_call_operand.hbm [shape: f32[16,32], index: 0, kind: input, shape index: {}]   ;;  %s230_s1 = inlined_call_operand.vmem [shape: f32[1,32], index: 1, kind: input, shape index: {}]   ;;  %s231_s2 = inlined_call_operand.vmem [shape: f32[1,32], index: 2, kind: input, shape index: {}]   ;;  %s232_s3 = inlined_call_operand.hbm [shape: bf16[16,32], index: 3, kind: output, shape index: {}]  }
   0x1   :  { %9 = vsyncpa [#allocation4], 0  ;;  %s169_s12 = smov [#allocation2]   ;;  %s121_s16 = scalar_lea.hbm %s229_s0, 256 }
   0x2   :  { %s15_s13 = sshll.u32 %s169_s12, 4  ;;  %p122_p0 = scmp.ne.s32.totalorder %s229_s0, %s121_s16  ;;  %s16_s13 = int_to_ptr.vmem [resolvable:$true] %s15_s13 }
   0x3   :  { %p125_p1 = scmp.lt.u32.totalorder %s121_s16, %s229_s0 }
   0x5   :  { %p127_p2 = pnand %p125_p1, %p122_p0 }
   0x7   :  { %130 = shalt.err (!%p127_p2)
}
   0x8   :  { %s131_s21 = scalar_lea.vmem %s16_s13, 256  ;;  %p136_p4 = scmp.lt.s32.totalorder %s16_s13, %s16_s13 }
   0x9   :  { %p132_p3 = scmp.ne.s32.totalorder %s16_s13, %s131_s21  ;;  %p137_p5 = scmp.lt.s32.totalorder %s131_s21, %s131_s21 }
   0xb   :  { %p138_p6 = por %p137_p5, %p136_p4 }
   0xd   :  { %p139_p7 = pnand %p138_p6, %p132_p3 }
   0xf   :  { %142 = shalt.err (!%p139_p7)
}
  0x10   :  { %s170_s22 = smov 128   ;;  %s171_s23 = smov 8  }
  0x11   :  { %21 = dma.hbm_to_vmem [thread:$0]  %s229_s0, 256, %s16_s13, [#allocation3], %s170_s22, %s170_s22, %s171_s23  }
  0x12   :  { %165 = dma.done.wait [#allocation3], 256  }
  0x13   :  { %166 = vsyncadd [#allocation3], 4294967040  ;;  %vm33_vm0 = vcmask 261120   ;;  %v29_v0 = vld [vmem:[#allocation2] sm:$0xff]  ;;  %v30_v1 = vld [vmem:[#allocation2 + $0x8] sm:$0xff]  ;;  %vm85_vm1 = vcmask 257024  }
  0x14   :  { %v34_v2 = vsel %vm33_vm0, %v29_v0, 0.0  ;;  %v37_v3 = vsel %vm33_vm0, %v30_v1, 0.0  ;;  %v105_v21 = vld [vmem:[%s230_s1] ss:$0 sm:$0xff]  ;;  %s172_s29 = smov [#allocation5]  }
  0x15   :  { %35 = vadd.xlane.f32.xlu0 %v34_v2  ;;  %v106_v23 = vld [vmem:[%s231_s2] ss:$0 sm:$0xff]  ;;  %s93_s30 = sshll.u32 %s172_s29, 4  ;;  %s94_s30 = int_to_ptr.vmem [resolvable:$true] %s93_s30 }
  0x16   :  { %s143_s1 = scalar_lea.vmem %s94_s30, 128  ;;  %p148_p9 = scmp.lt.s32.totalorder %s94_s30, %s94_s30 }
  0x17   :  { %p144_p8 = scmp.ne.s32.totalorder %s94_s30, %s143_s1  ;;  %p149_p10 = scmp.lt.s32.totalorder %s143_s1, %s143_s1 }
  0x19   :  { %38 = vadd.xlane.f32.xlu0 %v37_v3  ;;  %p150_p11 = por %p149_p10, %p148_p9 }
  0x1b   :  { %p151_p12 = pnand %p150_p11, %p144_p8 }
  0xa2   :  { %v36_v4 = vpop.xlane.xlu0 %35 }
  0xa3   :  { %v41_v5 = vmul.f32 0.03125, %v36_v4 }
  0xa5   :  { %v43_v6 = vsub.f32 %v29_v0, %v41_v5 }
  0xa6   :  { %v39_v7 = vpop.xlane.xlu0 %38 }
  0xa7   :  { %v42_v8 = vmul.f32 0.03125, %v39_v7  ;;  %v45_v9 = vmul.f32 %v43_v6, %v43_v6 }
  0xa9   :  { %v44_v10 = vsub.f32 %v30_v1, %v42_v8  ;;  %v47_v11 = vsel %vm33_vm0, %v45_v9, 0.0 }
  0xaa   :  { %48 = vadd.xlane.f32.xlu1 %v47_v11 }
  0xab   :  { %v46_v12 = vmul.f32 %v44_v10, %v44_v10 }
  0xad   :  { %v50_v13 = vsel %vm33_vm0, %v46_v12, 0.0 }
  0xae   :  { %51 = vadd.xlane.f32.xlu1 %v50_v13 }
 0x137   :  { %v49_v14 = vpop.xlane.xlu1 %48 }
 0x138   :  { %v53_v15 = vmul.f32 0.03125, %v49_v14 }
 0x13a   :  { %v55_v16 = vadd.f32 1e-12, %v53_v15 }
 0x13b   :  { %v52_v17 = vpop.xlane.xlu1 %51 }
 0x13c   :  { %117 = vrsqrt.f32 %v55_v16  ;;  %v54_v18 = vmul.f32 0.03125, %v52_v17 }
 0x13e   :  { %v56_v19 = vadd.f32 1e-12, %v54_v18 }
 0x140   :  { %119 = vrsqrt.f32 %v56_v19 }
 0x146   :  { %v118_v20 = vpop.eup %117 }
 0x147   :  { %v59_v22 = vmul.f32 %v118_v20, %v43_v6 }
 0x149   :  { %v67_v24 = vmul.f32 %v105_v21, %v59_v22 }
 0x14a   :  { %v120_v25 = vpop.eup %119 }
 0x14b   :  { %v60_v26 = vmul.f32 %v120_v25, %v44_v10  ;;  %v75_v27 = vadd.f32 %v106_v23, %v67_v24 }
 0x14d   :  { %v68_v28 = vmul.f32 %v105_v21, %v60_v26  ;;  %v109_v29 = vpack.c.bf16 %v75_v27, %v75_v27 }
 0x14f   :  { %v76_v30 = vadd.f32 %v106_v23, %v68_v28  ;;  %86 = vst.msk [vmem:[#allocation5] sm:$0xf] %vm85_vm1, %v109_v29 }
 0x151   :  { %v110_v31 = vpack.c.bf16 %v76_v30, %v76_v30 }
 0x153   :  { %87 = vst.msk [vmem:[#allocation5 + $0x4] sm:$0xf] %vm85_vm1, %v110_v31 }
 0x154   :  { %154 = shalt.err (!%p151_p12)
}
 0x155   :  { %s155_s5 = scalar_lea.hbm %s232_s3, 128 }
 0x156   :  { %p156_p13 = scmp.ne.s32.totalorder %s232_s3, %s155_s5  ;;  %p159_p0 = scmp.lt.u32.totalorder %s155_s5, %s232_s3 }
 0x158   :  { %p161_p1 = pnand %p159_p0, %p156_p13 }
 0x15a   :  { %164 = shalt.err (!%p161_p1)
}
 0x15b   :  { %s173_s10 = smov 64   ;;  %s174_s11 = smov 4  }
 0x15c   :  { %99 = dma.vmem_to_hbm [thread:$0]  %s94_s30, 128, %s232_s3, [#allocation4], %s173_s10, %s173_s10, %s174_s11  }
 0x15d   :  { %167 = dma.done.wait [#allocation4], 128  }
 0x15e   :  { %168 = vsyncadd [#allocation4], 4294967168 }
 0x15f   :  { %103 = vsyncpa [#allocation3], 1 }
 0x160   :  { %104 = vsyncpa [#allocation4], 1 }

</bundles_post_ra>
